<compile_context>
chip_gen: v6e
topology: v6e:2x2x1
jax: 0.10.0
libtpu: 0.0.40
codegen_flags: <defaults>
</compile_context>

<pallas_src>
import jax
import jax.numpy as jnp
from jax.experimental import pallas as pl
from jax.experimental.pallas import tpu as pltpu

# argparse-driven hyperparams in the original script -> fixed here
NEURON = 32   # opt.neuron
LAYER = 2     # opt.layer
IN_F = 6      # input_shape
OUT_F = 2     # output_shape

SB = 512      # in-kernel lane-slab width (batch samples per slab)


def _round_up(x, m):
    return ((x + m - 1) // m) * m


def _num_tensorcores():
    """Best-effort TensorCores-per-device (megacore chips v4/v5p/v7x -> 2)."""
    try:
        kind = jax.devices()[0].device_kind.lower()
    except Exception:
        return 1
    return 2 if any(t in kind for t in ("v7", "7x", "v5p", "v4")) else 1


def g_xy_kernel(xT_ref, w1_ref, b1_ref, wh_ref, bh_ref, we_ref, be_ref, o_ref):
    """One batch tile: xT_ref (IN_F, tb) -> o_ref (OUT_F, tb), batch on lanes."""
    cdt = xT_ref.dtype
    f32 = jnp.float32

    # Weights / biases: loaded once per tile, resident in vregs (~15 vregs).
    w1 = w1_ref[...]
    b1 = b1_ref[...].astype(f32)
    whs = [wh_ref[i] for i in range(LAYER)]            # statically unrolled
    bhs = [bh_ref[i].astype(f32) for i in range(LAYER)]
    we = we_ref[...]
    be = be_ref[...].astype(f32)

    def mlp(x):
        # x: (IN_F, n) -> (OUT_F, n); MXU accumulates in f32, tanh in `cdt`.
        h = jnp.tanh((jnp.dot(w1, x, preferred_element_type=f32) + b1).astype(cdt))
        for w, b in zip(whs, bhs):
            h = jnp.tanh((jnp.dot(w, h, preferred_element_type=f32) + b).astype(cdt))
        return jnp.dot(we, h, preferred_element_type=f32) + be

    # Strip-mine the batch-lane axis into SB-wide slabs (static slices): each
    # slab's activations (NEURON x SB f32 = 16 vregs) stay in vregs across the
    # whole layer chain instead of round-tripping VMEM between layers.
    tb = xT_ref.shape[1]
    for start in range(0, tb, SB):
        stop = min(start + SB, tb)
        o_ref[:, start:stop] = mlp(xT_ref[:, start:stop]).astype(o_ref.dtype)


def _select_batch_tile(B, num_tc, max_batch_tile=None):
    """Large tiles to amortize the ~0.35us grid-step overhead; one full-extent
    block on 1-TC chips when it fits; even grid split on megacore chips."""
    tb_cap = 8192 if num_tc > 1 else 16384
    if max_batch_tile is not None:
        tb_cap = max(SB, _round_up(min(tb_cap, int(max_batch_tile)), SB))
    if B <= tb_cap:
        return B                                    # single full-extent block
    nblk = pl.cdiv(B, tb_cap)
    if num_tc > 1:
        nblk = _round_up(nblk, num_tc)              # even split across TCs
    return _round_up(pl.cdiv(B, nblk), SB)


def g_xy_forward_transposed(xT, params, *, compute_dtype=jnp.float32,
                            max_batch_tile=None):
    """Recommended entry point: xT (IN_F, B) -> (OUT_F, B), float32 output.

    Keeping batch on the trailing axis end-to-end means there are no HBM
    transpose round trips at the pallas_call boundary.  For the bf16 compute
    path, pass xT already in bfloat16 to also avoid the cast copy.
    """
    w1, b1, wh, bh, we, be = params
    in_f, B = xT.shape
    if in_f != IN_F:
        raise ValueError(f"expected xT of shape ({IN_F}, B), got {xT.shape}")

    cdt = jnp.dtype(compute_dtype)
    xT_c = xT if xT.dtype == cdt else xT.astype(cdt)
    w1_c, wh_c, we_c = w1.astype(cdt), wh.astype(cdt), we.astype(cdt)
    b1_f, bh_f, be_f = (b1.astype(jnp.float32), bh.astype(jnp.float32),
                        be.astype(jnp.float32))

    num_tc = _num_tensorcores()
    tb = _select_batch_tile(B, num_tc, max_batch_tile)
    grid = (pl.cdiv(B, tb),)

    flops = 2 * B * (IN_F * NEURON + LAYER * NEURON * NEURON + NEURON * OUT_F)
    transcendentals = B * NEURON * (LAYER + 1)
    bytes_accessed = int(
        xT_c.size * xT_c.dtype.itemsize + B * OUT_F * 4
        + sum(a.size * a.dtype.itemsize
              for a in (w1_c, b1_f, wh_c, bh_f, we_c, be_f)))

    # Tight-but-safe VMEM bound: double-buffered in/out blocks + resident
    # weights + slack (actual footprint is ~2-3 MiB at the largest tile).
    blk_bytes = 32 * _round_up(tb, 128)   # padded bytes of one (<=8-row, tb) block
    vmem_limit = int(max(8 << 20, 6 * blk_bytes))

    out_T = pl.pallas_call(
        g_xy_kernel,
        out_shape=jax.ShapeDtypeStruct((OUT_F, B), jnp.float32),
        grid_spec=pltpu.PrefetchScalarGridSpec(
            num_scalar_prefetch=0,
            grid=grid,
            in_specs=[
                pl.BlockSpec((IN_F, tb), lambda i: (0, i)),     # x^T tile (lane-dense)
                pl.BlockSpec(w1_c.shape, lambda i: (0, 0)),     # W1 (resident)
                pl.BlockSpec(b1_f.shape, lambda i: (0, 0)),     # b1
                pl.BlockSpec(wh_c.shape, lambda i: (0, 0, 0)),  # stacked hidden W
                pl.BlockSpec(bh_f.shape, lambda i: (0, 0, 0)),  # stacked hidden b
                pl.BlockSpec(we_c.shape, lambda i: (0, 0)),     # W_end
                pl.BlockSpec(be_f.shape, lambda i: (0, 0)),     # b_end
            ],
            out_specs=pl.BlockSpec((OUT_F, tb), lambda i: (0, i)),
        ),
        compiler_params=pltpu.CompilerParams(
            dimension_semantics=("parallel",),
            vmem_limit_bytes=vmem_limit,
        ),
        cost_estimate=pl.CostEstimate(
            flops=flops,
            transcendentals=transcendentals,
            bytes_accessed=bytes_accessed,
        ),
    )(xT_c, w1_c, b1_f, wh_c, bh_f, we_c, be_f)

    return out_T


def g_xy_forward(x, params, **kwargs):
    """PyTorch-layout parity wrapper: x (B, IN_F) -> (B, OUT_F).

    NOTE: the two boundary transposes here cost extra HBM round trips
    (~64 B/sample vs ~32 B/sample moved by the kernel itself); performance-
    sensitive callers should keep data in (IN_F, B) layout and call
    `g_xy_forward_transposed` directly.
    """
    return g_xy_forward_transposed(x.T, params, **kwargs).T


def init_params(key):
    """Weights stored PyTorch-style (out_features, in_features); biases as columns."""
    ks = jax.random.split(key, 6)
    scale = 0.1
    w1 = scale * jax.random.normal(ks[0], (NEURON, IN_F), jnp.float32)
    b1 = scale * jax.random.normal(ks[1], (NEURON, 1), jnp.float32)
    wh = scale * jax.random.normal(ks[2], (LAYER, NEURON, NEURON), jnp.float32)
    bh = scale * jax.random.normal(ks[3], (LAYER, NEURON, 1), jnp.float32)
    we = scale * jax.random.normal(ks[4], (OUT_F, NEURON), jnp.float32)
    be = scale * jax.random.normal(ks[5], (OUT_F, 1), jnp.float32)
    return w1, b1, wh, bh, we, be


def g_xy_reference(x, params):
    """Pure-JAX reference matching PyTorch semantics: y = x @ W.T + b."""
    w1, b1, wh, bh, we, be = params
    h = jnp.tanh(x @ w1.T + b1[:, 0])
    for i in range(LAYER):
        h = jnp.tanh(h @ wh[i].T + bh[i, :, 0])
    return h @ we.T + be[:, 0]


if __name__ == "__main__":
    key = jax.random.PRNGKey(0)
    kp, k1, k2, k3 = jax.random.split(key, 4)
    params = init_params(kp)

    # 1) tiny batch through the PyTorch-layout parity wrapper (single block)
    x1 = jax.random.normal(k1, (8, IN_F), jnp.float32)
    y1 = jax.block_until_ready(g_xy_forward(x1, params))
    r1 = g_xy_reference(x1, params)
    assert y1.shape == (8, OUT_F)
    assert jnp.allclose(y1, r1, atol=1e-5, rtol=1e-5), "mismatch (B=8, compat wrapper)"

    # 2) recommended transposed entry point; exercises full slab + in-kernel tail
    x2 = jax.random.normal(k2, (640, IN_F), jnp.float32)
    y2T = jax.block_until_ready(g_xy_forward_transposed(x2.T, params))
    r2 = g_xy_reference(x2, params)
    assert y2T.shape == (OUT_F, 640)
    assert jnp.allclose(y2T.T, r2, atol=1e-5, rtol=1e-5), "mismatch (B=640, transposed)"

    # 3) multi-block grid with a partial final block (small shapes via max_batch_tile)
    x3 = jax.random.normal(k3, (1300, IN_F), jnp.float32)
    y3T = jax.block_until_ready(
        g_xy_forward_transposed(x3.T, params, max_batch_tile=512))
    r3 = g_xy_reference(x3, params)
    assert jnp.allclose(y3T.T, r3, atol=1e-5, rtol=1e-5), "mismatch (B=1300, grid>1)"

    # 4) optional bf16 compute path (v6e/v7x bf16 EUP/MXU); f32 output, loose tol
    y4T = jax.block_until_ready(
        g_xy_forward_transposed(x2.T, params, compute_dtype=jnp.bfloat16))
    assert jnp.allclose(y4T.T, r2, atol=5e-2, rtol=5e-2), "mismatch (bf16 path)"

    print("KERNEL_OK")
</pallas_src>

<mosaic_0001>
module attributes {stable_mosaic.version = 11 : i64} {
  func.func @g_xy_kernel(%arg0: i32, %arg1: memref<6x8xf32, #tpu.memory_space<vmem>>, %arg2: memref<32x6xf32, #tpu.memory_space<vmem>>, %arg3: memref<32x1xf32, #tpu.memory_space<vmem>>, %arg4: memref<2x32x32xf32, #tpu.memory_space<vmem>>, %arg5: memref<2x32x1xf32, #tpu.memory_space<vmem>>, %arg6: memref<2x32xf32, #tpu.memory_space<vmem>>, %arg7: memref<2x1xf32, #tpu.memory_space<vmem>>, %arg8: memref<2x8xf32, #tpu.memory_space<vmem>>) attributes {dimension_semantics = [#tpu.dimension_semantics<parallel>], iteration_bounds = array<i64: 1>, scalar_prefetch = 0 : i64, scratch_operands = 0 : i64, tpu.core_type = #tpu.core_type<tc>, window_params = [{transform_indices = @transform_0, window_bounds = array<i64: 6, 8>}, {pipeline_mode = #tpu.pipeline_mode<synchronous>, transform_indices = @transform_1, window_bounds = array<i64: 32, 6>}, {pipeline_mode = #tpu.pipeline_mode<synchronous>, transform_indices = @transform_2, window_bounds = array<i64: 32, 1>}, {pipeline_mode = #tpu.pipeline_mode<synchronous>, transform_indices = @transform_3, window_bounds = array<i64: 2, 32, 32>}, {pipeline_mode = #tpu.pipeline_mode<synchronous>, transform_indices = @transform_4, window_bounds = array<i64: 2, 32, 1>}, {pipeline_mode = #tpu.pipeline_mode<synchronous>, transform_indices = @transform_5, window_bounds = array<i64: 2, 32>}, {pipeline_mode = #tpu.pipeline_mode<synchronous>, transform_indices = @transform_6, window_bounds = array<i64: 2, 1>}, {transform_indices = @transform_7, window_bounds = array<i64: 2, 8>}]} {
    %c0 = arith.constant 0 : index
    %c0_0 = arith.constant 0 : index
    %0 = vector.load %arg2[%c0, %c0_0] : memref<32x6xf32, #tpu.memory_space<vmem>>, vector<32x6xf32>
    %c0_1 = arith.constant 0 : index
    %c0_2 = arith.constant 0 : index
    %1 = vector.load %arg3[%c0_1, %c0_2] : memref<32x1xf32, #tpu.memory_space<vmem>>, vector<32x1xf32>
    %c0_3 = arith.constant 0 : index
    %c0_4 = arith.constant 0 : index
    %c0_5 = arith.constant 0 : index
    %2 = vector.load %arg4[%c0_3, %c0_4, %c0_5] : memref<2x32x32xf32, #tpu.memory_space<vmem>>, vector<1x32x32xf32>
    %3 = vector.shape_cast %2 : vector<1x32x32xf32> to vector<32x32xf32>
    %c1 = arith.constant 1 : index
    %c0_6 = arith.constant 0 : index
    %c0_7 = arith.constant 0 : index
    %4 = vector.load %arg4[%c1, %c0_6, %c0_7] : memref<2x32x32xf32, #tpu.memory_space<vmem>>, vector<1x32x32xf32>
    %5 = vector.shape_cast %4 : vector<1x32x32xf32> to vector<32x32xf32>
    %c0_8 = arith.constant 0 : index
    %c0_9 = arith.constant 0 : index
    %c0_10 = arith.constant 0 : index
    %6 = vector.load %arg5[%c0_8, %c0_9, %c0_10] : memref<2x32x1xf32, #tpu.memory_space<vmem>>, vector<1x32x1xf32>
    %7 = vector.shape_cast %6 : vector<1x32x1xf32> to vector<32x1xf32>
    %c1_11 = arith.constant 1 : index
    %c0_12 = arith.constant 0 : index
    %c0_13 = arith.constant 0 : index
    %8 = vector.load %arg5[%c1_11, %c0_12, %c0_13] : memref<2x32x1xf32, #tpu.memory_space<vmem>>, vector<1x32x1xf32>
    %9 = vector.shape_cast %8 : vector<1x32x1xf32> to vector<32x1xf32>
    %c0_14 = arith.constant 0 : index
    %c0_15 = arith.constant 0 : index
    %10 = vector.load %arg6[%c0_14, %c0_15] : memref<2x32xf32, #tpu.memory_space<vmem>>, vector<2x32xf32>
    %c0_16 = arith.constant 0 : index
    %c0_17 = arith.constant 0 : index
    %11 = vector.load %arg7[%c0_16, %c0_17] : memref<2x1xf32, #tpu.memory_space<vmem>>, vector<2x1xf32>
    %c0_18 = arith.constant 0 : index
    %c0_19 = arith.constant 0 : index
    %12 = vector.load %arg1[%c0_18, %c0_19] : memref<6x8xf32, #tpu.memory_space<vmem>>, vector<6x8xf32>
    %cst = arith.constant dense<0.000000e+00> : vector<32x8xf32>
    %13 = tpu.matmul %0, %12, %cst {dimension_numbers = #tpu.dot_dimension_numbers<[1], [0], [0], [1], [0, 0, 1, 1], [], []>} : vector<32x6xf32>, vector<6x8xf32>, vector<32x8xf32> -> vector<32x8xf32>
    %14 = vector.broadcast %1 : vector<32x1xf32> to vector<32x8xf32>
    %15 = arith.addf %13, %14 : vector<32x8xf32>
    %16 = math.tanh %15 : vector<32x8xf32>
    %cst_20 = arith.constant dense<0.000000e+00> : vector<32x8xf32>
    %17 = tpu.matmul %3, %16, %cst_20 {dimension_numbers = #tpu.dot_dimension_numbers<[1], [0], [0], [1], [0, 0, 1, 1], [], []>} : vector<32x32xf32>, vector<32x8xf32>, vector<32x8xf32> -> vector<32x8xf32>
    %18 = vector.broadcast %7 : vector<32x1xf32> to vector<32x8xf32>
    %19 = arith.addf %17, %18 : vector<32x8xf32>
    %20 = math.tanh %19 : vector<32x8xf32>
    %cst_21 = arith.constant dense<0.000000e+00> : vector<32x8xf32>
    %21 = tpu.matmul %5, %20, %cst_21 {dimension_numbers = #tpu.dot_dimension_numbers<[1], [0], [0], [1], [0, 0, 1, 1], [], []>} : vector<32x32xf32>, vector<32x8xf32>, vector<32x8xf32> -> vector<32x8xf32>
    %22 = vector.broadcast %9 : vector<32x1xf32> to vector<32x8xf32>
    %23 = arith.addf %21, %22 : vector<32x8xf32>
    %24 = math.tanh %23 : vector<32x8xf32>
    %cst_22 = arith.constant dense<0.000000e+00> : vector<2x8xf32>
    %25 = tpu.matmul %10, %24, %cst_22 {dimension_numbers = #tpu.dot_dimension_numbers<[1], [0], [0], [1], [0, 0, 1, 1], [], []>} : vector<2x32xf32>, vector<32x8xf32>, vector<2x8xf32> -> vector<2x8xf32>
    %26 = vector.broadcast %11 : vector<2x1xf32> to vector<2x8xf32>
    %27 = arith.addf %25, %26 : vector<2x8xf32>
    %c0_23 = arith.constant 0 : index
    %c0_24 = arith.constant 0 : index
    %28 = vector.load %arg8[%c0_23, %c0_24] : memref<2x8xf32, #tpu.memory_space<vmem>>, vector<2x8xf32>
    tpu.vector_store %arg8[%c0_23, %c0_24], %27 {strides = array<i32>} : memref<2x8xf32, #tpu.memory_space<vmem>>, vector<2x8xf32>,
    return
  }
  func.func @transform_0(%arg0: i32) -> (i32, i32) {
    %c0_i32 = arith.constant 0 : i32
    %c0_i32_0 = arith.constant 0 : i32
    return %c0_i32, %arg0 : i32, i32
  }
  func.func @transform_1(%arg0: i32) -> (i32, i32) {
    %c0_i32 = arith.constant 0 : i32
    %c0_i32_0 = arith.constant 0 : i32
    %c0_i32_1 = arith.constant 0 : i32
    return %c0_i32, %c0_i32_0 : i32, i32
  }
  func.func @transform_2(%arg0: i32) -> (i32, i32) {
    %c0_i32 = arith.constant 0 : i32
    %c0_i32_0 = arith.constant 0 : i32
    %c0_i32_1 = arith.constant 0 : i32
    return %c0_i32, %c0_i32_0 : i32, i32
  }
  func.func @transform_3(%arg0: i32) -> (i32, i32, i32) {
    %c0_i32 = arith.constant 0 : i32
    %c0_i32_0 = arith.constant 0 : i32
    %c0_i32_1 = arith.constant 0 : i32
    %c0_i32_2 = arith.constant 0 : i32
    return %c0_i32, %c0_i32_0, %c0_i32_1 : i32, i32, i32
  }
  func.func @transform_4(%arg0: i32) -> (i32, i32, i32) {
    %c0_i32 = arith.constant 0 : i32
    %c0_i32_0 = arith.constant 0 : i32
    %c0_i32_1 = arith.constant 0 : i32
    %c0_i32_2 = arith.constant 0 : i32
    return %c0_i32, %c0_i32_0, %c0_i32_1 : i32, i32, i32
  }
  func.func @transform_5(%arg0: i32) -> (i32, i32) {
    %c0_i32 = arith.constant 0 : i32
    %c0_i32_0 = arith.constant 0 : i32
    %c0_i32_1 = arith.constant 0 : i32
    return %c0_i32, %c0_i32_0 : i32, i32
  }
  func.func @transform_6(%arg0: i32) -> (i32, i32) {
    %c0_i32 = arith.constant 0 : i32
    %c0_i32_0 = arith.constant 0 : i32
    %c0_i32_1 = arith.constant 0 : i32
    return %c0_i32, %c0_i32_0 : i32, i32
  }
  func.func @transform_7(%arg0: i32) -> (i32, i32) {
    %c0_i32 = arith.constant 0 : i32
    %c0_i32_0 = arith.constant 0 : i32
    return %c0_i32, %arg0 : i32, i32
  }
}

</mosaic_0001>

<bundles_post_ra>
// kernel: tpu_custom_call.1
= control target key start
LH: loop header
LB: loop body
LE: loop exit
PB: predicated region body
PF: predicated region fallthrough
CT: control target
= control target key end

     0   :  { %vm89_vm0 = vcmask 1045504   ;;  %vm76_vm1 = vcmask 48128   ;;  %v666_v5 = vmov 0   ;;  %s807_s0 = inlined_call_operand.vmem [shape: f32[6,8], index: 0, kind: input, shape index: {}]   ;;  %s808_s1 = inlined_call_operand.vmem [shape: f32[32,6], index: 1, kind: input, shape index: {}]   ;;  %s809_s2 = inlined_call_operand.vmem [shape: f32[32,1], index: 2, kind: input, shape index: {}]   ;;  %s810_s3 = inlined_call_operand.vmem [shape: f32[2,32,32], index: 3, kind: input, shape index: {}]   ;;  %s811_s4 = inlined_call_operand.vmem [shape: f32[2,32,1], index: 4, kind: input, shape index: {}]   ;;  %s812_s5 = inlined_call_operand.vmem [shape: f32[2,32], index: 5, kind: input, shape index: {}]   ;;  %s813_s6 = inlined_call_operand.vmem [shape: f32[2,1], index: 6, kind: input, shape index: {}]   ;;  %s814_s7 = inlined_call_operand.hbm [shape: f32[2,8], index: 7, kind: output, shape index: {}]  }
   0x1   :  { %v55_v0 = vld [vmem:[%s807_s0] sm:$0x3f]  ;;  %v28_v2 = vld [vmem:[%s808_s1 + $0x8] sm:$0xff]  ;;  %v29_v3 = vld [vmem:[%s808_s1 + $0x10] sm:$0xff]  ;;  %618 = vset.pattern.permute.xlu0 %v666_v5  ;;  %619 = vset.pattern.permute.xlu1 %v666_v5 }
   0x2   :  { %v27_v1 = vld [vmem:[%s808_s1] sm:$0xff]  ;;  %567 = vmatprep.subr.msk.mxu0 %vm89_vm0, %v55_v0  ;;  %v34_v4 = vld [vmem:[%s809_s2 + $0x18] sm:$0xff]  ;;  %v32_v6 = vld [vmem:[%s809_s2 + $0x8] sm:$0xff] }
   0x3   :  { %569 = vmatprep.mubr.msk.f32.mxu0 %vm76_vm1, %v27_v1  ;;  %568 = vmatpush3.msk.msra.mxu0 %vm89_vm0, %v55_v0  ;;  %v30_v7 = vld [vmem:[%s808_s1 + $0x18] sm:$0xff]  ;;  %v33_v8 = vld [vmem:[%s809_s2 + $0x10] sm:$0xff]  ;;  %v31_v9 = vld [vmem:[%s809_s2] sm:$0xff] }
   0x4   :  { %570 = vmatmul.mubr.msk.f32.vlgmr.msra.gmra.mxu0 %vm76_vm1, %v28_v2  ;;  %73 = vperm.xlu0 %618, %v34_v4  }
   0x5   :  { %572 = vmatprep.mubr.msk.f32.mxu0 %vm76_vm1, %v29_v3  ;;  %63 = vperm.xlu1 %619, %v32_v6  }
   0x6   :  { %12 = vsyncpa [#allocation3], 0  ;;  %v47_v10 = vld [vmem:[%s811_s4 + $0x18] sm:$0xff]  ;;  %v46_v11 = vld [vmem:[%s811_s4 + $0x10] sm:$0xff]  ;;  %vm202_vm2 = vcmask 261120   ;;  %v667_v59 = vmov 0.0  }
   0x7   :  { %v45_v12 = vld [vmem:[%s811_s4 + $0x8] sm:$0xff]  ;;  %v44_v13 = vld [vmem:[%s811_s4] sm:$0xff]  ;;  %v526_v14 = vld [vmem:[%s811_s4 + $0x38] sm:$0xff]  ;;  %vm668_vm3 = vmmov 0   ;;  %s669_s23 = smov [#allocation2]   ;;  %vm503_vm4 = vcmask 58368  }
   0x8   :  { %573 = vmatmul.mubr.msk.f32.gmra.mxu0 %vm76_vm1, %v30_v7  ;;  %68 = vperm.xlu0 %618, %v33_v8   ;;  %v525_v15 = vld [vmem:[%s811_s4 + $0x30] sm:$0xff]  ;;  %v524_v16 = vld [vmem:[%s811_s4 + $0x28] sm:$0xff]  ;;  %v523_v17 = vld [vmem:[%s811_s4 + $0x20] sm:$0xff]  ;;  %s511_s24 = sshll.u32 %s669_s23, 4  ;;  %s512_s24 = int_to_ptr.vmem [resolvable:$true] %s511_s24 }
   0x9   :  { %58 = vperm.xlu1 %619, %v31_v9   ;;  %v54_v18 = vld [vmem:[%s813_s6] sm:$0x3]  ;;  %v36_v36 = vld [vmem:[%s810_s3 + $0x8] sm:$0xff]  ;;  %v37_v37 = vld [vmem:[%s810_s3 + $0x10] sm:$0xff]  ;;  %s644_s25 = scalar_lea.vmem %s512_s24, 32  ;;  %p649_p1 = scmp.lt.s32.totalorder %s512_s24, %s512_s24 }
   0xa   :  { %v35_v19 = vld [vmem:[%s810_s3] sm:$0xff]  ;;  %v38_v38 = vld [vmem:[%s810_s3 + $0x18] sm:$0xff]  ;;  %v520_v56 = vld [vmem:[%s810_s3 + $0x28] sm:$0xff]  ;;  %p645_p0 = scmp.ne.s32.totalorder %s512_s24, %s644_s25  ;;  %p650_p2 = scmp.lt.s32.totalorder %s644_s25, %s644_s25 }
   0xb   :  { %583 = vmatprep.mubr.msk.f32.mxu1 %vm202_vm2, %v35_v19  ;;  %v519_v39 = vld [vmem:[%s810_s3 + $0x20] sm:$0xff]  ;;  %v521_v57 = vld [vmem:[%s810_s3 + $0x30] sm:$0xff]  ;;  %v522_v58 = vld [vmem:[%s810_s3 + $0x38] sm:$0xff] }
   0xc   :  { %199 = vperm.xlu0 %618, %v47_v10   ;;  %597 = vmatprep.mubr.msk.f32.mxu0 %vm202_vm2, %v519_v39  ;;  %p651_p3 = por %p650_p2, %p649_p1 }
   0xd   :  { %194 = vperm.xlu1 %619, %v46_v11   ;;  %v53_v11 = vld [vmem:[%s812_s5] sm:$0x3] }
   0xe   :  { %p652_p4 = pnand %p651_p3, %p645_p0 }
  0x10   :  { %189 = vperm.xlu0 %618, %v45_v12  }
  0x11   :  { %184 = vperm.xlu1 %619, %v44_v13  }
  0x14   :  { %321 = vperm.xlu0 %618, %v526_v14  }
  0x15   :  { %316 = vperm.xlu1 %619, %v525_v15  }
  0x18   :  { %311 = vperm.xlu0 %618, %v524_v16  }
  0x19   :  { %306 = vperm.xlu1 %619, %v523_v17  }
  0x1c   :  { %427 = vperm.xlu0 %618, %v54_v18  }
  0x7f   :  { %v74_v20 = vpop.permute.xlu0 %73 }
  0x80   :  { %v64_v22 = vpop.permute.xlu1 %63 }
  0x83   :  { %v69_v26 = vpop.permute.xlu0 %68 }
  0x84   :  { %v59_v30 = vpop.permute.xlu1 %58 }
  0x87   :  { %v200_v40 = vpop.permute.xlu0 %199 }
  0x88   :  { %v195_v42 = vpop.permute.xlu1 %194 }
  0x8b   :  { %v190_v46 = vpop.permute.xlu0 %189 }
  0x8c   :  { %v185_v50 = vpop.permute.xlu1 %184 }
  0x8f   :  { %v322_v60 = vpop.permute.xlu0 %321 }
  0x90   :  { %v317_v62 = vpop.permute.xlu1 %316 }
  0x93   :  { %v312_v2 = vpop.permute.xlu0 %311 }
  0x94   :  { %v307_v6 = vpop.permute.xlu1 %306 }
  0x97   :  { %v428_v13 = vpop.permute.xlu0 %427 }
  0xc4   :  { %v571_v21 = vpop.f32.mrf.mxu0 }
  0xc5   :  { %v165_v28 = vadd.f32 %v571_v21, %v64_v22 }
  0xc6   :  { %v159_v23 = vpop.f32.mrf.mxu0 }
  0xc7   :  { %v160_v31 = vadd.f32 %v159_v23, %v59_v30 }
  0xc8   :  { %v574_v24 = vpop.f32.mrf.mxu0 }
  0xc9   :  { %v175_v25 = vadd.f32 %v574_v24, %v74_v20 }
  0xca   :  { %v169_v27 = vpop.f32.mrf.mxu0 }
  0xcb   :  { %620 = vtanh.f32 %v175_v25  ;;  %v170_v29 = vadd.f32 %v169_v27, %v69_v26 }
  0xcd   :  { %622 = vtanh.f32 %v170_v29 }
  0xce   :  { %624 = vtanh.f32 %v165_v28 }
  0xcf   :  { %626 = vtanh.f32 %v160_v31 }
  0xd8   :  { %v621_v32 = vpop.eup %620 }
  0xd9   :  { %575 = vmatprep.subr.mxu1 %v621_v32 }
  0xda   :  { %v623_v33 = vpop.eup %622  ;;  %576 = vmatpush3.msra.mxu1 %v621_v32 }
  0xdb   :  { %577 = vmatprep.subr.mxu1 %v623_v33  ;;  %v625_v34 = vpop.eup %624 }
  0xdc   :  { %578 = vmatpush3.msra.mxu1 %v623_v33  ;;  %v627_v35 = vpop.eup %626 }
  0xdd   :  { %579 = vmatprep.subr.mxu1 %v625_v34 }
  0xde   :  { %580 = vmatpush3.msra.mxu1 %v625_v34 }
  0xdf   :  { %581 = vmatprep.subr.mxu1 %v627_v35 }
  0xe0   :  { %582 = vmatpush3.msra.mxu1 %v627_v35 }
  0xe1   :  { %584 = vmatmul.mubr.msk.f32.vlgmr.msra.gmra.mxu1 %vm202_vm2, %v36_v36  ;;  %603 = vmatprep.subr.mxu1 %v667_v59 }
  0xe2   :  { %586 = vmatprep.mubr.msk.f32.mxu1 %vm202_vm2, %v37_v37 }
  0xe5   :  { %587 = vmatmul.mubr.msk.f32.gmra.mxu1 %vm202_vm2, %v38_v38 }
  0xe6   :  { %611 = vmatprep.mubr.msk.f32.mxu1 %vm668_vm3, %v667_v59 }
 0x1a1   :  { %v585_v41 = vpop.f32.mrf.mxu1 }
 0x1a2   :  { %v287_v48 = vadd.f32 %v585_v41, %v190_v46 }
 0x1a3   :  { %v281_v43 = vpop.f32.mrf.mxu1 }
 0x1a4   :  { %v282_v51 = vadd.f32 %v281_v43, %v185_v50 }
 0x1a5   :  { %v588_v44 = vpop.f32.mrf.mxu1 }
 0x1a6   :  { %v297_v45 = vadd.f32 %v588_v44, %v200_v40 }
 0x1a7   :  { %v291_v47 = vpop.f32.mrf.mxu1 }
 0x1a8   :  { %628 = vtanh.f32 %v297_v45  ;;  %v292_v49 = vadd.f32 %v291_v47, %v195_v42 }
 0x1aa   :  { %630 = vtanh.f32 %v292_v49 }
 0x1ab   :  { %632 = vtanh.f32 %v287_v48 }
 0x1ac   :  { %634 = vtanh.f32 %v282_v51 }
 0x1b5   :  { %v629_v52 = vpop.eup %628 }
 0x1b6   :  { %589 = vmatprep.subr.mxu0 %v629_v52 }
 0x1b7   :  { %v631_v53 = vpop.eup %630  ;;  %590 = vmatpush3.msra.mxu0 %v629_v52 }
 0x1b8   :  { %591 = vmatprep.subr.mxu0 %v631_v53  ;;  %v633_v54 = vpop.eup %632 }
 0x1b9   :  { %592 = vmatpush3.msra.mxu0 %v631_v53  ;;  %v635_v55 = vpop.eup %634 }
 0x1ba   :  { %593 = vmatprep.subr.mxu0 %v633_v54 }
 0x1bb   :  { %594 = vmatpush3.msra.mxu0 %v633_v54 }
 0x1bc   :  { %595 = vmatprep.subr.mxu0 %v635_v55 }
 0x1bd   :  { %596 = vmatpush3.msra.mxu0 %v635_v55 }
 0x1be   :  { %598 = vmatmul.mubr.msk.f32.vlgmr.msra.gmra.mxu0 %vm202_vm2, %v520_v56 }
 0x1bf   :  { %600 = vmatprep.mubr.msk.f32.mxu0 %vm202_vm2, %v521_v57 }
 0x1c2   :  { %601 = vmatmul.mubr.msk.f32.gmra.mxu0 %vm202_vm2, %v522_v58 }
 0x27e   :  { %v599_v61 = vpop.f32.mrf.mxu0 }
 0x27f   :  { %v408_v4 = vadd.f32 %v599_v61, %v312_v2 }
 0x280   :  { %v402_v63 = vpop.f32.mrf.mxu0 }
 0x281   :  { %v403_v7 = vadd.f32 %v402_v63, %v307_v6 }
 0x282   :  { %v602_v0 = vpop.f32.mrf.mxu0 }
 0x283   :  { %v418_v1 = vadd.f32 %v602_v0, %v322_v60 }
 0x284   :  { %v412_v3 = vpop.f32.mrf.mxu0 }
 0x285   :  { %636 = vtanh.f32 %v418_v1  ;;  %v413_v5 = vadd.f32 %v412_v3, %v317_v62 }
 0x287   :  { %638 = vtanh.f32 %v413_v5 }
 0x288   :  { %640 = vtanh.f32 %v408_v4 }
 0x289   :  { %642 = vtanh.f32 %v403_v7 }
 0x292   :  { %v637_v8 = vpop.eup %636 }
 0x293   :  { %604 = vmatpush3.msra.mxu1 %v637_v8 }
 0x294   :  { %v639_v9 = vpop.eup %638  ;;  %605 = vmatprep.subr.mxu1 %v667_v59 }
 0x295   :  { %606 = vmatpush3.msra.mxu1 %v639_v9  ;;  %v641_v10 = vpop.eup %640 }
 0x296   :  { %607 = vmatprep.subr.mxu1 %v667_v59  ;;  %v643_v12 = vpop.eup %642 }
 0x297   :  { %608 = vmatpush3.msra.mxu1 %v641_v10 }
 0x298   :  { %609 = vmatprep.subr.mxu1 %v667_v59 }
 0x299   :  { %610 = vmatpush3.msra.mxu1 %v643_v12 }
 0x29a   :  { %612 = vmatmul.mubr.msk.f32.vlgmr.msra.gmra.mxu1 %vm202_vm2, %v53_v11 }
 0x35a   :  { %v499_v14 = vpop.f32.mrf.mxu1 }
 0x35b   :  { %v500_v15 = vadd.f32 %v499_v14, %v428_v13 }
 0x35c   :  { %v613_v16 = vpop.f32.mrf.mxu1 }
 0x35d   :  { %504 = vst.msk [vmem:[#allocation2] sm:$0x3] %vm503_vm4, %v500_v15 }
 0x35e   :  { %655 = shalt.err (!%p652_p4)
}
 0x35f   :  { %514 = dma.vmem_to_hbm [thread:$0]  %s512_s24, 32, %s814_s7, [#allocation3]  }
 0x360   :  { %664 = dma.done.wait [#allocation3], 32  }
 0x361   :  { %665 = vsyncadd [#allocation3], 4294967264 }
 0x362   :  { %518 = vsyncpa [#allocation3], 1 }

</bundles_post_ra>
